<compile_context>
chip_gen: v5e
topology: v5e:2x2
jax: 0.10.0
libtpu: 0.0.40
codegen_flags: <defaults>
</compile_context>

<pallas_src>
import numpy as np
import jax
import jax.numpy as jnp
from jax.experimental import pallas as pl
from jax.experimental.pallas import tpu as pltpu

_HEADS = ("pi_h", "pi_l", "vf")


def _round_up(x, m):
    return ((x + m - 1) // m) * m


def _default_compute_dtype():
    """bf16 on v6e/v7x (native fast MXU path), f32 otherwise."""
    try:
        kind = jax.devices()[0].device_kind.lower()
    except Exception:
        return jnp.float32
    if any(tag in kind for tag in ("v6", "v7", "tpu7")):
        return jnp.bfloat16
    return jnp.float32


# -----------------------------------------------------------------------------
# Init-time packing: static plan + packed parameter slab (numpy, done once).
# -----------------------------------------------------------------------------
def pack_params(params, feature_dim, compute_dtype=None):
    """Pack every Linear layer into ONE padded slab.  Build once, reuse per call.

    Slab layout per "level" (one fused matmul in the kernel):
        rows [off, off + k_in)  : weight (zero-padded to k_in input rows)
        row  [off + k_in]       : bias
        (entry padded to a multiple of 8 rows; columns padded to n_max_pad)

    Levels = trunk layers, then ONE fused level holding the first layer of
    every head (weights concatenated along the output dim), then any deeper
    per-head layers.
    """
    if compute_dtype is None:
        compute_dtype = _default_compute_dtype()

    shared_layers = params["shared"]
    d_shared = feature_dim
    for w, _ in shared_layers:
        d_shared = int(w.shape[1])
    # Width of `shared` as seen inside the kernel: raw feature_dim if there is
    # no trunk, otherwise the 128-padded output width of the last trunk layer.
    k_shared = feature_dim if not shared_layers else _round_up(d_shared, 128)

    head_depths = {h: len(params[h]) for h in _HEADS}

    entries = []  # dicts: w [K,N], b [N], k_in, n, n_pad, off

    def add_entry(w, b, k_in):
        w = np.asarray(w, np.float32)
        b = np.reshape(np.asarray(b, np.float32), (-1,))
        n = int(w.shape[1])
        entries.append(dict(w=w, b=b, k_in=int(k_in), n=n,
                            n_pad=_round_up(n, 128)))
        return len(entries) - 1

    # Trunk (shared) layers.  First layer consumes the UNPADDED feature_dim.
    trunk_ids = []
    prev_k = feature_dim
    for (w, b) in shared_layers:
        trunk_ids.append(add_entry(w, b, prev_k))
        prev_k = _round_up(int(w.shape[1]), 128)

    # Fused first head layer: concat active heads' W0 along the output dim.
    active = [h for h in _HEADS if head_depths[h] >= 1]
    heads0_id = None
    heads0_segs = {}
    if active:
        ws, bs, col = [], [], 0
        for h in active:
            w0, b0 = params[h][0]
            heads0_segs[h] = (col, int(w0.shape[1]))
            col += int(w0.shape[1])
            ws.append(np.asarray(w0, np.float32))
            bs.append(np.reshape(np.asarray(b0, np.float32), (-1,)))
        heads0_id = add_entry(np.concatenate(ws, axis=1),
                              np.concatenate(bs, axis=0), k_shared)

    # Deeper per-head layers (rare; not hit by the common net_arch).
    deep_ids = {h: [] for h in _HEADS}
    for h in _HEADS:
        layers = params[h]
        for li in range(1, len(layers)):
            w, b = layers[li]
            if li == 1:
                k_in = int(layers[0][0].shape[1])            # exact slice width
            else:
                k_in = _round_up(int(layers[li - 1][0].shape[1]), 128)
            deep_ids[h].append(add_entry(w, b, k_in))

    # Place entries in the slab (pure numpy; no per-call device work).
    n_max_pad = max([e["n_pad"] for e in entries], default=128)
    row = 0
    for e in entries:
        e["off"] = row
        row += _round_up(e["k_in"] + 1, 8)
    total_rows = max(_round_up(row, 8), 8)

    slab_np = np.zeros((total_rows, n_max_pad), np.float32)
    for e in entries:
        k_act, n_act = e["w"].shape
        slab_np[e["off"]:e["off"] + k_act, :n_act] = e["w"]
        slab_np[e["off"] + e["k_in"], :n_act] = e["b"]
    slab = jnp.asarray(slab_np, dtype=compute_dtype)  # single init-time transfer

    # Final (compact, lane-dense) output layout.
    final_dims = {h: (int(params[h][-1][0].shape[1]) if head_depths[h]
                      else d_shared) for h in _HEADS}
    final_segs, col = {}, 0
    for h in _HEADS:
        final_segs[h] = (col, final_dims[h])
        col += final_dims[h]
    out_pad = _round_up(col, 128)

    # If every head has exactly one layer, the fused head-0 result already is
    # the final concatenated latent block (same segments, same padded width).
    direct_write = all(head_depths[h] == 1 for h in _HEADS)

    def lv(idx):
        e = entries[idx]
        return (e["off"], e["k_in"], e["n"], e["n_pad"])

    plan = dict(
        feature_dim=int(feature_dim),
        out_pad=out_pad,
        d_shared=d_shared,
        trunk=[lv(i) for i in trunk_ids],
        heads0=((lv(heads0_id), heads0_segs) if heads0_id is not None else None),
        deep={h: [lv(i) for i in deep_ids[h]] for h in _HEADS},
        head_depths=head_depths,
        final_segs=final_segs,
        direct_write=direct_write,
    )
    return dict(plan=plan, slab=slab, compute_dtype=compute_dtype)


# -----------------------------------------------------------------------------
# Kernel
# -----------------------------------------------------------------------------
def _make_kernel(plan):
    def _layer(h, slab_ref, level):
        off, k_in, _n, n_pad = level
        w = slab_ref[off:off + k_in, 0:n_pad]
        b = slab_ref[off + k_in:off + k_in + 1, 0:n_pad]
        y = jnp.dot(h.astype(w.dtype), w, preferred_element_type=jnp.float32)
        return jnp.tanh(y + b.astype(jnp.float32))

    def kernel(x_ref, slab_ref, out_ref):
        h = x_ref[...]
        for level in plan["trunk"]:
            h = _layer(h, slab_ref, level)
        shared = h  # [tile_b, k_shared] (zero-padded lanes if trunk exists)

        fused = None
        if plan["heads0"] is not None:
            level, _segs = plan["heads0"]
            fused = _layer(shared, slab_ref, level)  # one dot for all 3 heads

        if plan["direct_write"]:
            # Fused head outputs already form the final lane-dense latent
            # block [pi_h | pi_l | vf | zero-pad]; single unmasked store.
            out_ref[...] = fused.astype(out_ref.dtype)
            return

        # General (ragged-depth) path.
        tile_b = x_ref.shape[0]
        pieces = []
        for head in _HEADS:
            depth = plan["head_depths"][head]
            if depth == 0:
                lat = shared[:, 0:plan["d_shared"]]
            else:
                s, sz = plan["heads0"][1][head]
                lat = fused[:, s:s + sz]
                for level in plan["deep"][head]:
                    lat = _layer(lat, slab_ref, level)
                lat = lat[:, 0:plan["final_segs"][head][1]]
            pieces.append(lat.astype(jnp.float32))
        used = sum(int(p.shape[1]) for p in pieces)
        if used < plan["out_pad"]:
            pieces.append(jnp.zeros((tile_b, plan["out_pad"] - used),
                                    jnp.float32))
        out_ref[...] = jnp.concatenate(pieces, axis=1).astype(out_ref.dtype)

    return kernel


# -----------------------------------------------------------------------------
# Wrapper
# -----------------------------------------------------------------------------
def hybrid_mlp_extractor(features, packed, *, tile_b=1024, return_packed=False):
    """Forward pass of HybridMlpExtractor as one fused Pallas kernel.

    Args:
      features: [B, feature_dim] array.
      packed: result of `pack_params(params, feature_dim, ...)` (built once).
      tile_b: target batch rows per grid step (large to amortize the ~0.35us
        per-grid-step overhead; per-tile VMEM is only a few MiB even at 2048).
      return_packed: also return the lane-dense [B, out_pad] block + segment
        map so downstream consumers can skip the narrow per-head slices.

    Returns:
      (latent_pi_h, latent_pi_l, latent_vf), each [B, dim] float32.
    """
    plan, slab = packed["plan"], packed["slab"]
    compute_dtype = packed["compute_dtype"]

    B, feature_dim = features.shape
    assert feature_dim == plan["feature_dim"], "feature_dim mismatch vs pack_params"
    out_pad = plan["out_pad"]

    # bf16 packs 2 rows/sublane -> 16-row batch-tile granularity; f32 -> 8.
    sublane = 16 if jnp.dtype(compute_dtype) == jnp.dtype(jnp.bfloat16) else 8

    num_tiles = max(1, -(-B // tile_b))
    # Large batches: ensure >=2 tiles so the "parallel" grid axis shards the
    # work across both TensorCores on v7x (no cost on single-TC chips).
    if num_tiles == 1 and B >= 512:
        num_tiles = 2
    tile_rows = _round_up(-(-B // num_tiles), sublane)
    b_pad = tile_rows * num_tiles

    # Cast (halves streamed bytes when bf16) and row-pad ONLY if needed — no
    # column padding of the input anymore.
    x = features.astype(compute_dtype)
    if b_pad != B:
        x = jnp.pad(x, ((0, b_pad - B), (0, 0)))

    kernel = _make_kernel(plan)

    out = pl.pallas_call(
        kernel,
        out_shape=jax.ShapeDtypeStruct((b_pad, out_pad), jnp.float32),
        grid=(num_tiles,),
        in_specs=[
            # Activations stream over the batch grid; last block dim equals the
            # full (unpadded) feature_dim, which satisfies the (8,128) rule.
            pl.BlockSpec((tile_rows, feature_dim), lambda i: (i, 0)),
            # Single packed parameter slab; constant index_map keeps it
            # VMEM-resident across all batch tiles.  (pl.Buffered(1) would drop
            # its second buffer; left at the default for broad compatibility —
            # the slab is only ~0.1 MiB here.)
            pl.BlockSpec(slab.shape, lambda i: (0, 0)),
        ],
        out_specs=pl.BlockSpec((tile_rows, out_pad), lambda i: (i, 0)),
        compiler_params=pltpu.CompilerParams(
            dimension_semantics=("parallel",)),
    )(x, slab)

    results = []
    for h in _HEADS:
        s, sz = plan["final_segs"][h]
        results.append(out[:B, s:s + sz])
    if return_packed:
        return tuple(results), (out[:B], dict(plan["final_segs"]))
    return tuple(results)


# -----------------------------------------------------------------------------
# Deterministic parameter construction (synthetic init, no checkpoint).
# -----------------------------------------------------------------------------
def init_params(key, feature_dim, net_arch):
    """Mirror HybridMlpExtractor.__init__ layer construction."""
    shared_sizes = []
    pi_sizes, vf_sizes = [], []
    for layer in net_arch:
        if isinstance(layer, int):
            shared_sizes.append(layer)
        else:
            pi_sizes = list(layer.get("pi", []))
            vf_sizes = list(layer.get("vf", []))
            break

    def make_stack(key, in_dim, sizes):
        layers = []
        for out_dim in sizes:
            key, kw, kb = jax.random.split(key, 3)
            bound = 1.0 / jnp.sqrt(in_dim)
            w = jax.random.uniform(kw, (in_dim, out_dim), jnp.float32,
                                   -bound, bound)
            b = jax.random.uniform(kb, (1, out_dim), jnp.float32,
                                   -bound, bound)
            layers.append((w, b))
            in_dim = out_dim
        return key, layers, in_dim

    key, shared, shared_out = make_stack(key, feature_dim, shared_sizes)
    key, pi_h, _ = make_stack(key, shared_out, pi_sizes)
    key, pi_l, _ = make_stack(key, shared_out, pi_sizes)
    key, vf, _ = make_stack(key, shared_out, vf_sizes)
    return {"shared": shared, "pi_h": pi_h, "pi_l": pi_l, "vf": vf}


def reference_forward(features, params):
    """Pure-JAX reference (same semantics as the PyTorch forward)."""

    def run(h, layers):
        for w, b in layers:
            h = jnp.tanh(h @ w + b)
        return h

    shared = run(features, params["shared"])
    return (run(shared, params["pi_h"]),
            run(shared, params["pi_l"]),
            run(shared, params["vf"]))


# -----------------------------------------------------------------------------
if __name__ == "__main__":
    key = jax.random.PRNGKey(0)

    batch = 8
    feature_dim = 32
    net_arch = [64, {"pi": [32], "vf": [32]}]

    key, kx, kp = jax.random.split(key, 3)
    features = jax.random.normal(kx, (batch, feature_dim), jnp.float32)
    params = init_params(kp, feature_dim, net_arch)

    ref_pi_h, ref_pi_l, ref_vf = reference_forward(features, params)

    # 1) Exact-accuracy path (f32 weights/activations, bit-level check).
    packed_f32 = pack_params(params, feature_dim, compute_dtype=jnp.float32)
    fwd_f32 = jax.jit(lambda f: hybrid_mlp_extractor(f, packed_f32))
    pi_h, pi_l, vf = fwd_f32(features)
    jax.block_until_ready((pi_h, pi_l, vf))
    assert pi_h.shape == ref_pi_h.shape and pi_l.shape == ref_pi_l.shape
    assert vf.shape == ref_vf.shape
    assert jnp.allclose(pi_h, ref_pi_h, atol=1e-5), "pi_h mismatch (f32)"
    assert jnp.allclose(pi_l, ref_pi_l, atol=1e-5), "pi_l mismatch (f32)"
    assert jnp.allclose(vf, ref_vf, atol=1e-5), "vf mismatch (f32)"

    # 2) Default path: bf16 compute on v6e/v7x (f32 accumulation), f32 on
    #    older generations.  bf16 quantizes the weights, so the tolerance is
    #    intentionally looser on those chips.
    packed_auto = pack_params(params, feature_dim)
    fwd_auto = jax.jit(lambda f: hybrid_mlp_extractor(f, packed_auto))
    a_pi_h, a_pi_l, a_vf = fwd_auto(features)
    jax.block_until_ready((a_pi_h, a_pi_l, a_vf))
    exact = jnp.dtype(packed_auto["compute_dtype"]) == jnp.dtype(jnp.float32)
    tol = 1e-5 if exact else 8e-2
    assert jnp.allclose(a_pi_h, ref_pi_h, atol=tol), "pi_h mismatch (auto)"
    assert jnp.allclose(a_pi_l, ref_pi_l, atol=tol), "pi_l mismatch (auto)"
    assert jnp.allclose(a_vf, ref_vf, atol=tol), "vf mismatch (auto)"

    print("KERNEL_OK")
</pallas_src>

<mosaic_0001>
module attributes {stable_mosaic.version = 11 : i64} {
  func.func @kernel(%arg0: i32, %arg1: memref<8x32xf32, #tpu.memory_space<vmem>>, %arg2: memref<176x128xf32, #tpu.memory_space<vmem>>, %arg3: memref<8x128xf32, #tpu.memory_space<vmem>>) attributes {dimension_semantics = [#tpu.dimension_semantics<parallel>], iteration_bounds = array<i64: 1>, scalar_prefetch = 0 : i64, scratch_operands = 0 : i64, tpu.core_type = #tpu.core_type<tc>, window_params = [{transform_indices = @transform_0, window_bounds = array<i64: 8, 32>}, {pipeline_mode = #tpu.pipeline_mode<synchronous>, transform_indices = @transform_1, window_bounds = array<i64: 176, 128>}, {transform_indices = @transform_2, window_bounds = array<i64: 8, 128>}]} {
    %c0 = arith.constant 0 : index
    %c0_0 = arith.constant 0 : index
    %0 = vector.load %arg1[%c0, %c0_0] : memref<8x32xf32, #tpu.memory_space<vmem>>, vector<8x32xf32>
    %c0_1 = arith.constant 0 : index
    %c0_2 = arith.constant 0 : index
    %1 = vector.load %arg2[%c0_1, %c0_2] : memref<176x128xf32, #tpu.memory_space<vmem>>, vector<32x128xf32>
    %c32 = arith.constant 32 : index
    %c0_3 = arith.constant 0 : index
    %2 = vector.load %arg2[%c32, %c0_3] : memref<176x128xf32, #tpu.memory_space<vmem>>, vector<1x128xf32>
    %cst = arith.constant dense<0.000000e+00> : vector<8x128xf32>
    %3 = tpu.matmul %0, %1, %cst {dimension_numbers = #tpu.dot_dimension_numbers<[1], [0], [0], [1], [0, 0, 1, 1], [], []>} : vector<8x32xf32>, vector<32x128xf32>, vector<8x128xf32> -> vector<8x128xf32>
    %4 = vector.broadcast %2 : vector<1x128xf32> to vector<8x128xf32>
    %5 = arith.addf %3, %4 : vector<8x128xf32>
    %6 = math.tanh %5 : vector<8x128xf32>
    %c40 = arith.constant 40 : index
    %c0_4 = arith.constant 0 : index
    %7 = vector.load %arg2[%c40, %c0_4] : memref<176x128xf32, #tpu.memory_space<vmem>>, vector<128x128xf32>
    %c168 = arith.constant 168 : index
    %c0_5 = arith.constant 0 : index
    %8 = vector.load %arg2[%c168, %c0_5] : memref<176x128xf32, #tpu.memory_space<vmem>>, vector<1x128xf32>
    %cst_6 = arith.constant dense<0.000000e+00> : vector<8x128xf32>
    %9 = tpu.matmul %6, %7, %cst_6 {dimension_numbers = #tpu.dot_dimension_numbers<[1], [0], [0], [1], [0, 0, 1, 1], [], []>} : vector<8x128xf32>, vector<128x128xf32>, vector<8x128xf32> -> vector<8x128xf32>
    %10 = vector.broadcast %8 : vector<1x128xf32> to vector<8x128xf32>
    %11 = arith.addf %9, %10 : vector<8x128xf32>
    %12 = math.tanh %11 : vector<8x128xf32>
    %c0_7 = arith.constant 0 : index
    %c0_8 = arith.constant 0 : index
    %13 = vector.load %arg3[%c0_7, %c0_8] : memref<8x128xf32, #tpu.memory_space<vmem>>, vector<8x128xf32>
    tpu.vector_store %arg3[%c0_7, %c0_8], %12 {strides = array<i32>} : memref<8x128xf32, #tpu.memory_space<vmem>>, vector<8x128xf32>,
    return
  }
  func.func @transform_0(%arg0: i32) -> (i32, i32) {
    %c0_i32 = arith.constant 0 : i32
    %c0_i32_0 = arith.constant 0 : i32
    return %arg0, %c0_i32 : i32, i32
  }
  func.func @transform_1(%arg0: i32) -> (i32, i32) {
    %c0_i32 = arith.constant 0 : i32
    %c0_i32_0 = arith.constant 0 : i32
    %c0_i32_1 = arith.constant 0 : i32
    return %c0_i32, %c0_i32_0 : i32, i32
  }
  func.func @transform_2(%arg0: i32) -> (i32, i32) {
    %c0_i32 = arith.constant 0 : i32
    %c0_i32_0 = arith.constant 0 : i32
    return %arg0, %c0_i32 : i32, i32
  }
}

</mosaic_0001>

<bundles_post_ra>
// kernel: _lambda_.1
= control target key start
LH: loop header
LB: loop body
LE: loop exit
PB: predicated region body
PF: predicated region fallthrough
CT: control target
= control target key end

     0   :  { %7 = vsyncpa [#allocation3], 0  ;;  %s210_s0 = inlined_call_operand.hbm [shape: f32[8,32], index: 0, kind: input, shape index: {}]   ;;  %s211_s1 = inlined_call_operand.hbm [shape: f32[176,128], index: 1, kind: input, shape index: {}]   ;;  %s212_s2 = inlined_call_operand.vmem [shape: f32[8,128], index: 2, kind: output, shape index: {}]  }
   0x1   :  { %s14_s11 = sshll.u32 %s210_s0, 4  ;;  %s15_s11 = int_to_ptr.hbm [resolvable:$true] %s14_s11 }
   0x2   :  { %8 = vsyncpa [#allocation5], 0  ;;  %s182_s12 = smov [#allocation2]   ;;  %s24_s16 = sshll.u32 %s211_s1, 4  ;;  %s25_s16 = int_to_ptr.hbm [resolvable:$true] %s24_s16 }
   0x3   :  { %s16_s13 = sshll.u32 %s182_s12, 4  ;;  %s183_s17 = smov [#allocation4]   ;;  %s17_s13 = int_to_ptr.vmem [resolvable:$true] %s16_s13 }
   0x4   :  { %19 = dma.hbm_to_vmem [thread:$0]  %s15_s11, 128, %s17_s13, [#allocation3]  }
   0x5   :  { %s26_s18 = sshll.u32 %s183_s17, 4  ;;  %s184_s19 = smov 128   ;;  %s27_s18 = int_to_ptr.vmem [resolvable:$true] %s26_s18 }
   0x6   :  { %s185_s20 = smov 8  }
   0x7   :  { %32 = dma.hbm_to_vmem [thread:$0]  %s25_s16, 2816, %s27_s18, [#allocation5], %s184_s19, %s184_s19, %s185_s20  }
   0x8   :  { %178 = dma.done.wait [#allocation3], 128  }
   0x9   :  { %179 = vsyncadd [#allocation3], 4294967168 }
   0xa   :  { %180 = dma.done.wait [#allocation5], 2816  }
   0xb   :  { %181 = vsyncadd [#allocation5], 4294964480  ;;  %v45_v0 = vld [vmem:[#allocation4 + $0x18] sm:$0xff]  ;;  %v44_v1 = vld [vmem:[#allocation4 + $0x10] sm:$0xff]  ;;  %vm48_vm0 = vcmask 261120  }
   0xc   :  { %64 = vmatpush.msra.mxu0 %v45_v0  ;;  %v88_v2 = vld [vmem:[#allocation4 + $0xa0] sm:$0xff]  ;;  %v43_v3 = vld [vmem:[#allocation4 + $0x8] sm:$0xff]  ;;  %v87_v4 = vld [vmem:[#allocation4 + $0x98] sm:$0xff] }
   0xd   :  { %91 = vmatpush.msra.mxu1 %v88_v2  ;;  %v86_v5 = vld [vmem:[#allocation4 + $0x90] sm:$0xff]  ;;  %v42_v6 = vld [vmem:[#allocation4] sm:$0xff]  ;;  %v41_v7 = vld [vmem:[#allocation2] sm:$0xff] }
   0xe   :  { %65 = vmatpush.msra.mxu0 %v44_v1  ;;  %v85_v8 = vld [vmem:[#allocation4 + $0x88] sm:$0xff]  ;;  %v84_v9 = vld [vmem:[#allocation4 + $0x80] sm:$0xff]  ;;  %v83_v10 = vld [vmem:[#allocation4 + $0x78] sm:$0xff] }
   0xf   :  { %92 = vmatpush.msra.mxu1 %v87_v4  ;;  %v82_v11 = vld [vmem:[#allocation4 + $0x70] sm:$0xff]  ;;  %v81_v12 = vld [vmem:[#allocation4 + $0x68] sm:$0xff]  ;;  %v80_v13 = vld [vmem:[#allocation4 + $0x60] sm:$0xff] }
  0x10   :  { %66 = vmatpush.msra.mxu0 %v43_v3  ;;  %v79_v14 = vld [vmem:[#allocation4 + $0x58] sm:$0xff]  ;;  %v78_v15 = vld [vmem:[#allocation4 + $0x50] sm:$0xff]  ;;  %v77_v16 = vld [vmem:[#allocation4 + $0x48] sm:$0xff] }
  0x11   :  { %93 = vmatpush.msra.mxu1 %v86_v5  ;;  %v76_v17 = vld [vmem:[#allocation4 + $0x40] sm:$0xff]  ;;  %v75_v18 = vld [vmem:[#allocation4 + $0x38] sm:$0xff]  ;;  %v74_v19 = vld [vmem:[#allocation4 + $0x30] sm:$0xff] }
  0x12   :  { %67 = vmatpush.msra.mxu0 %v42_v6  ;;  %v73_v20 = vld [vmem:[#allocation4 + $0x28] sm:$0xff]  ;;  %v124_v21 = vld [vmem:[#allocation4 + $0x20] ss:$0 sm:$0xff] }
  0x13   :  { %119 = vmatmul.msk.f32.vlgmr.msra.gmra.mxu0 %vm48_vm0, %v41_v7  ;;  %94 = vmatpush.msra.mxu1 %v85_v8  ;;  %v125_v25 = vld [vmem:[#allocation4 + $0xa8] ss:$0 sm:$0xff] }
  0x15   :  { %95 = vmatpush.msra.mxu1 %v84_v9 }
  0x17   :  { %96 = vmatpush.msra.mxu1 %v83_v10 }
  0x19   :  { %97 = vmatpush.msra.mxu1 %v82_v11 }
  0x1b   :  { %98 = vmatpush.msra.mxu1 %v81_v12 }
  0x1d   :  { %99 = vmatpush.msra.mxu1 %v80_v13 }
  0x1f   :  { %100 = vmatpush.msra.mxu1 %v79_v14 }
  0x21   :  { %101 = vmatpush.msra.mxu1 %v78_v15 }
  0x23   :  { %102 = vmatpush.msra.mxu1 %v77_v16 }
  0x25   :  { %103 = vmatpush.msra.mxu1 %v76_v17 }
  0x27   :  { %104 = vmatpush.msra.mxu1 %v75_v18 }
  0x29   :  { %105 = vmatpush.msra.mxu1 %v74_v19 }
  0x2b   :  { %106 = vmatpush.msra.mxu1 %v73_v20 }
  0x90   :  { %v69_v22 = vpop.f32.mrf.mxu0 }
  0x91   :  { %v70_v23 = vadd.f32 %v124_v21, %v69_v22 }
  0x93   :  { %126 = vtanh.f32 %v70_v23 }
  0x99   :  { %v127_v24 = vpop.eup %126 }
  0x9a   :  { %107 = vmatmul.f32.vlgmr.msra.gmra.mxu1 %v127_v24 }
 0x117   :  { %v108_v26 = vpop.f32.mrf.mxu1 }
 0x118   :  { %v109_v27 = vadd.f32 %v125_v25, %v108_v26 }
 0x11a   :  { %128 = vtanh.f32 %v109_v27 }
 0x120   :  { %v129_v28 = vpop.eup %128 }
 0x121   :  { %112 = vst [vmem:[%s212_s2] sm:$0xff] %v129_v28 }
 0x122   :  { %117 = vsyncpa [#allocation3], 1 }
 0x123   :  { %118 = vsyncpa [#allocation5], 1 }

</bundles_post_ra>
